<compile_context>
chip_gen: v7x
topology: tpu7x:2x2x1
jax: 0.10.0
libtpu: 0.0.40
codegen_flags: <defaults>
</compile_context>

<pallas_src>
import functools

import jax
import jax.numpy as jnp
from jax.experimental import pallas as pl
from jax.experimental.pallas import tpu as pltpu

EPS = 1e-5


def _ibn_kernel(x_ref, w_ref, b_ref, o_ref, *, hw, n, half, c_tile):
    """Fused Instance/Batch norm with per-channel statistic selection.

    x_ref block: (N, C_TILE, HW) -- all of N and all of H*W present, so the
    per-(n, c) InstanceNorm stats and the per-c BatchNorm stats are both
    complete within this single grid step.
    """
    x = x_ref[...].astype(jnp.float32)                       # (N, Ct, HW)

    # One pass over the big tensor for both norms: sum and sum of squares.
    s1 = jnp.sum(x, axis=-1, keepdims=True)                  # (N, Ct, 1)
    s2 = jnp.sum(x * x, axis=-1, keepdims=True)              # (N, Ct, 1)

    # InstanceNorm statistics: per (n, c) over H*W.
    inv_hw = jnp.float32(1.0 / hw)
    mu_in = s1 * inv_hw
    var_in = jnp.maximum(s2 * inv_hw - mu_in * mu_in, 0.0)

    # BatchNorm (training) statistics: per c over (N, H*W); reuse the partial
    # sums -- only a tiny (N, Ct, 1) -> (1, Ct, 1) reduction remains.
    inv_nhw = jnp.float32(1.0 / (n * hw))
    mu_bn = jnp.sum(s1, axis=0, keepdims=True) * inv_nhw      # (1, Ct, 1)
    var_bn = jnp.maximum(
        jnp.sum(s2, axis=0, keepdims=True) * inv_nhw - mu_bn * mu_bn, 0.0)

    # Per-channel select: channels [0, half) -> IN, [half, C) -> BN.
    c0 = pl.program_id(0) * c_tile
    cidx = c0 + jax.lax.broadcasted_iota(jnp.int32, (1, c_tile, 1), 1)
    is_in = cidx < half
    mu = jnp.where(is_in, mu_in, mu_bn)                       # (N, Ct, 1)
    var = jnp.where(is_in, var_in, var_bn)                    # (N, Ct, 1)

    # Fused affine: out = x * scale + shift (scale/shift on tiny stats tensors).
    gamma = w_ref[...][None, :, :]                            # (1, Ct, 1)
    beta = b_ref[...][None, :, :]
    scale = gamma * jax.lax.rsqrt(var + EPS)                  # (N, Ct, 1)
    shift = beta - mu * scale
    o_ref[...] = (x * scale + shift).astype(o_ref.dtype)


def _pick_c_tile(c, n, hw, itemsize, budget_bytes=4 << 20):
    """Largest multiple-of-8 channel tile dividing c with a block <= budget.

    Budget leaves room for double-buffered input + output blocks inside the
    default scoped-VMEM limit. If c is not a multiple of 8, fall back to the
    full channel extent (block dims equal to the array dims are always legal).
    """
    if c % 8 != 0:
        return c
    best = 8
    for t in range(8, c + 1, 8):
        if c % t == 0 and n * t * hw * itemsize <= budget_bytes:
            best = t
    return best


def ibn2d_forward(x, in_w, in_b, bn_w, bn_b, *, half):
    """x: (N, C, H, W). IN (affine) on channels [0, half), BN on [half, C)."""
    N, C, H, W = x.shape
    HW = H * W
    x3 = x.reshape(N, C, HW)                # contiguous reshape -> free

    # Full-length affine params; concatenation of C scalars is negligible.
    w = jnp.concatenate([jnp.asarray(in_w, jnp.float32).reshape(-1),
                         jnp.asarray(bn_w, jnp.float32).reshape(-1)]).reshape(C, 1)
    b = jnp.concatenate([jnp.asarray(in_b, jnp.float32).reshape(-1),
                         jnp.asarray(bn_b, jnp.float32).reshape(-1)]).reshape(C, 1)

    c_tile = _pick_c_tile(C, N, HW, x3.dtype.itemsize)
    grid = (C // c_tile,)

    kernel = functools.partial(_ibn_kernel, hw=HW, n=N, half=half,
                               c_tile=c_tile)

    out3 = pl.pallas_call(
        kernel,
        out_shape=jax.ShapeDtypeStruct((N, C, HW), x.dtype),
        grid_spec=pltpu.PrefetchScalarGridSpec(
            num_scalar_prefetch=0,
            grid=grid,
            in_specs=[
                pl.BlockSpec((N, c_tile, HW), lambda c: (0, c, 0)),
                pl.BlockSpec((c_tile, 1), lambda c: (c, 0)),
                pl.BlockSpec((c_tile, 1), lambda c: (c, 0)),
            ],
            out_specs=pl.BlockSpec((N, c_tile, HW), lambda c: (0, c, 0)),
        ),
        compiler_params=pltpu.CompilerParams(
            dimension_semantics=("parallel",)),
    )(x3, w, b)
    return out3.reshape(N, C, H, W)


def _reference(x, in_w, in_b, bn_w, bn_b, half):
    x = x.astype(jnp.float32)
    xi, xb = x[:, :half], x[:, half:]
    mu_i = xi.mean(axis=(2, 3), keepdims=True)
    var_i = ((xi - mu_i) ** 2).mean(axis=(2, 3), keepdims=True)
    o1 = (xi - mu_i) / jnp.sqrt(var_i + EPS)
    o1 = o1 * in_w[None, :, None, None] + in_b[None, :, None, None]
    mu_b = xb.mean(axis=(0, 2, 3), keepdims=True)
    var_b = ((xb - mu_b) ** 2).mean(axis=(0, 2, 3), keepdims=True)
    o2 = (xb - mu_b) / jnp.sqrt(var_b + EPS)
    o2 = o2 * bn_w[None, :, None, None] + bn_b[None, :, None, None]
    return jnp.concatenate([o1, o2], axis=1)


if __name__ == "__main__":
    planes, ratio = 4, 0.5
    half = int(planes * ratio)          # channels sent to InstanceNorm
    rest = planes - half                # channels sent to BatchNorm

    key = jax.random.PRNGKey(0)
    kx, kiw, kbw = jax.random.split(key, 3)

    # "weights_init_kaiming"-style init for norm affine params:
    # weight ~ N(1.0, 0.02), bias = 0.
    x = jax.random.normal(kx, (2, planes, 16, 16), dtype=jnp.float32)
    in_w = 1.0 + 0.02 * jax.random.normal(kiw, (half,), dtype=jnp.float32)
    in_b = jnp.zeros((half,), dtype=jnp.float32)
    bn_w = 1.0 + 0.02 * jax.random.normal(kbw, (rest,), dtype=jnp.float32)
    bn_b = jnp.zeros((rest,), dtype=jnp.float32)

    out = ibn2d_forward(x, in_w, in_b, bn_w, bn_b, half=half)
    out = jax.block_until_ready(out)

    ref = _reference(x, in_w, in_b, bn_w, bn_b, half)
    assert out.shape == x.shape
    assert jnp.max(jnp.abs(out - ref)) < 1e-4

    print("KERNEL_OK")
</pallas_src>

<mosaic_0001>
module attributes {stable_mosaic.version = 11 : i64} {
  func.func @_ibn_kernel(%arg0: i32, %arg1: memref<2x4x256xf32, #tpu.memory_space<vmem>>, %arg2: memref<4x1xf32, #tpu.memory_space<vmem>>, %arg3: memref<4x1xf32, #tpu.memory_space<vmem>>, %arg4: memref<2x4x256xf32, #tpu.memory_space<vmem>>) attributes {dimension_semantics = [#tpu.dimension_semantics<parallel>], iteration_bounds = array<i64: 1>, scalar_prefetch = 0 : i64, scratch_operands = 0 : i64, tpu.core_type = #tpu.core_type<tc>, window_params = [{transform_indices = @transform_0, window_bounds = array<i64: 2, 4, 256>}, {transform_indices = @transform_1, window_bounds = array<i64: 4, 1>}, {transform_indices = @transform_2, window_bounds = array<i64: 4, 1>}, {transform_indices = @transform_3, window_bounds = array<i64: 2, 4, 256>}]} {
    %c0 = arith.constant 0 : index
    %c0_0 = arith.constant 0 : index
    %c0_1 = arith.constant 0 : index
    %0 = vector.load %arg1[%c0, %c0_0, %c0_1] : memref<2x4x256xf32, #tpu.memory_space<vmem>>, vector<2x4x256xf32>
    %cst = arith.constant dense<0.000000e+00> : vector<2x4xf32>
    %1 = vector.multi_reduction <add>, %0, %cst [2] : vector<2x4x256xf32> to vector<2x4xf32>
    %2 = vector.shape_cast %1 : vector<2x4xf32> to vector<2x4x1xf32>
    %3 = arith.mulf %0, %0 : vector<2x4x256xf32>
    %cst_2 = arith.constant dense<0.000000e+00> : vector<2x4xf32>
    %4 = vector.multi_reduction <add>, %3, %cst_2 [2] : vector<2x4x256xf32> to vector<2x4xf32>
    %5 = vector.shape_cast %4 : vector<2x4xf32> to vector<2x4x1xf32>
    %cst_3 = arith.constant 3.906250e-03 : f32
    %6 = vector.broadcast %cst_3 : f32 to vector<2x4x1xf32>
    %7 = arith.mulf %2, %6 : vector<2x4x1xf32>
    %cst_4 = arith.constant 3.906250e-03 : f32
    %8 = vector.broadcast %cst_4 : f32 to vector<2x4x1xf32>
    %9 = arith.mulf %5, %8 : vector<2x4x1xf32>
    %10 = arith.mulf %7, %7 : vector<2x4x1xf32>
    %11 = arith.subf %9, %10 : vector<2x4x1xf32>
    %cst_5 = arith.constant 0.000000e+00 : f32
    %12 = vector.broadcast %cst_5 : f32 to vector<2x4x1xf32>
    %13 = arith.maximumf %11, %12 : vector<2x4x1xf32>
    %cst_6 = arith.constant dense<0.000000e+00> : vector<4x1xf32>
    %14 = vector.multi_reduction <add>, %2, %cst_6 [0] : vector<2x4x1xf32> to vector<4x1xf32>
    %15 = vector.shape_cast %14 : vector<4x1xf32> to vector<1x4x1xf32>
    %cst_7 = arith.constant 0.001953125 : f32
    %16 = vector.broadcast %cst_7 : f32 to vector<1x4x1xf32>
    %17 = arith.mulf %15, %16 : vector<1x4x1xf32>
    %cst_8 = arith.constant dense<0.000000e+00> : vector<4x1xf32>
    %18 = vector.multi_reduction <add>, %5, %cst_8 [0] : vector<2x4x1xf32> to vector<4x1xf32>
    %19 = vector.shape_cast %18 : vector<4x1xf32> to vector<1x4x1xf32>
    %cst_9 = arith.constant 0.001953125 : f32
    %20 = vector.broadcast %cst_9 : f32 to vector<1x4x1xf32>
    %21 = arith.mulf %19, %20 : vector<1x4x1xf32>
    %22 = arith.mulf %17, %17 : vector<1x4x1xf32>
    %23 = arith.subf %21, %22 : vector<1x4x1xf32>
    %cst_10 = arith.constant 0.000000e+00 : f32
    %24 = vector.broadcast %cst_10 : f32 to vector<1x4x1xf32>
    %25 = arith.maximumf %23, %24 : vector<1x4x1xf32>
    %c4_i32 = arith.constant 4 : i32
    %26 = arith.muli %arg0, %c4_i32 : i32
    %27 = tpu.iota {dimensions = array<i32: 1>} : vector<1x4x1xi32>
    %28 = vector.broadcast %26 : i32 to vector<1x4x1xi32>
    %29 = arith.addi %28, %27 : vector<1x4x1xi32>
    %c2_i32 = arith.constant 2 : i32
    %30 = vector.broadcast %c2_i32 : i32 to vector<1x4x1xi32>
    %31 = arith.cmpi slt, %29, %30 : vector<1x4x1xi32>
    %32 = vector.shape_cast %31 : vector<1x4x1xi1> to vector<1x4x1xi1>
    %33 = vector.broadcast %32 : vector<1x4x1xi1> to vector<2x4x1xi1>
    %34 = vector.shape_cast %17 : vector<1x4x1xf32> to vector<1x4x1xf32>
    %35 = vector.broadcast %34 : vector<1x4x1xf32> to vector<2x4x1xf32>
    %36 = arith.select %33, %7, %35 : vector<2x4x1xi1>, vector<2x4x1xf32>
    %37 = vector.shape_cast %31 : vector<1x4x1xi1> to vector<1x4x1xi1>
    %38 = vector.broadcast %37 : vector<1x4x1xi1> to vector<2x4x1xi1>
    %39 = vector.shape_cast %25 : vector<1x4x1xf32> to vector<1x4x1xf32>
    %40 = vector.broadcast %39 : vector<1x4x1xf32> to vector<2x4x1xf32>
    %41 = arith.select %38, %13, %40 : vector<2x4x1xi1>, vector<2x4x1xf32>
    %c0_11 = arith.constant 0 : index
    %c0_12 = arith.constant 0 : index
    %42 = vector.load %arg2[%c0_11, %c0_12] : memref<4x1xf32, #tpu.memory_space<vmem>>, vector<4x1xf32>
    %43 = vector.shape_cast %42 : vector<4x1xf32> to vector<1x4x1xf32>
    %c0_13 = arith.constant 0 : index
    %c0_14 = arith.constant 0 : index
    %44 = vector.load %arg3[%c0_13, %c0_14] : memref<4x1xf32, #tpu.memory_space<vmem>>, vector<4x1xf32>
    %45 = vector.shape_cast %44 : vector<4x1xf32> to vector<1x4x1xf32>
    %cst_15 = arith.constant 9.99999974E-6 : f32
    %46 = vector.broadcast %cst_15 : f32 to vector<2x4x1xf32>
    %47 = arith.addf %41, %46 : vector<2x4x1xf32>
    %48 = math.rsqrt %47 : vector<2x4x1xf32>
    %49 = vector.broadcast %43 : vector<1x4x1xf32> to vector<2x4x1xf32>
    %50 = arith.mulf %49, %48 : vector<2x4x1xf32>
    %51 = arith.mulf %36, %50 : vector<2x4x1xf32>
    %52 = vector.broadcast %45 : vector<1x4x1xf32> to vector<2x4x1xf32>
    %53 = arith.subf %52, %51 : vector<2x4x1xf32>
    %54 = vector.broadcast %50 : vector<2x4x1xf32> to vector<2x4x256xf32>
    %55 = arith.mulf %0, %54 : vector<2x4x256xf32>
    %56 = vector.broadcast %53 : vector<2x4x1xf32> to vector<2x4x256xf32>
    %57 = arith.addf %55, %56 : vector<2x4x256xf32>
    %c0_16 = arith.constant 0 : index
    %c0_17 = arith.constant 0 : index
    %c0_18 = arith.constant 0 : index
    %58 = vector.load %arg4[%c0_16, %c0_17, %c0_18] : memref<2x4x256xf32, #tpu.memory_space<vmem>>, vector<2x4x256xf32>
    tpu.vector_store %arg4[%c0_16, %c0_17, %c0_18], %57 {strides = array<i32>} : memref<2x4x256xf32, #tpu.memory_space<vmem>>, vector<2x4x256xf32>,
    return
  }
  func.func @transform_0(%arg0: i32) -> (i32, i32, i32) {
    %c0_i32 = arith.constant 0 : i32
    %c0_i32_0 = arith.constant 0 : i32
    %c0_i32_1 = arith.constant 0 : i32
    return %c0_i32, %arg0, %c0_i32_0 : i32, i32, i32
  }
  func.func @transform_1(%arg0: i32) -> (i32, i32) {
    %c0_i32 = arith.constant 0 : i32
    %c0_i32_0 = arith.constant 0 : i32
    return %arg0, %c0_i32 : i32, i32
  }
  func.func @transform_2(%arg0: i32) -> (i32, i32) {
    %c0_i32 = arith.constant 0 : i32
    %c0_i32_0 = arith.constant 0 : i32
    return %arg0, %c0_i32 : i32, i32
  }
  func.func @transform_3(%arg0: i32) -> (i32, i32, i32) {
    %c0_i32 = arith.constant 0 : i32
    %c0_i32_0 = arith.constant 0 : i32
    %c0_i32_1 = arith.constant 0 : i32
    return %c0_i32, %arg0, %c0_i32_0 : i32, i32, i32
  }
}

</mosaic_0001>

<bundles_post_ra>
// kernel: tpu_custom_call.1
= control target key start
LH: loop header
LB: loop body
LE: loop exit
PB: predicated region body
PF: predicated region fallthrough
CT: control target
= control target key end

     0   :  { %8 = vsyncpa [#allocation3], 0  ;;  %s338_s0 = inlined_call_operand.hbm [shape: f32[2,4,256], index: 0, kind: input, shape index: {}]   ;;  %s339_s1 = inlined_call_operand.vmem [shape: f32[4,1], index: 1, kind: input, shape index: {}]   ;;  %s340_s2 = inlined_call_operand.vmem [shape: f32[4,1], index: 2, kind: input, shape index: {}]   ;;  %s341_s3 = inlined_call_operand.hbm [shape: f32[2,4,256], index: 3, kind: output, shape index: {}]  }
   0x1   :  { %9 = vsyncpa [#allocation4], 0  ;;  %s244_s12 = smov [#allocation2]   ;;  %s196_s16 = scalar_lea.hbm %s338_s0, 256 }
   0x2   :  { %s15_s13 = sshll.u32 %s244_s12, 4  ;;  %p197_p0 = scmp.ne.s32.totalorder %s338_s0, %s196_s16  ;;  %s16_s13 = int_to_ptr.vmem [resolvable:$true] %s15_s13 }
   0x3   :  { %p200_p1 = scmp.lt.u32.totalorder %s196_s16, %s338_s0 }
   0x5   :  { %p202_p2 = pnand %p200_p1, %p197_p0 }
   0x7   :  { %205 = shalt.err (!%p202_p2)
}
   0x8   :  { %s206_s21 = scalar_lea.vmem %s16_s13, 256  ;;  %p211_p4 = scmp.lt.s32.totalorder %s16_s13, %s16_s13 }
   0x9   :  { %p207_p3 = scmp.ne.s32.totalorder %s16_s13, %s206_s21  ;;  %p212_p5 = scmp.lt.s32.totalorder %s206_s21, %s206_s21 }
   0xb   :  { %p213_p6 = por %p212_p5, %p211_p4 }
   0xd   :  { %p214_p7 = pnand %p213_p6, %p207_p3 }
   0xf   :  { %217 = shalt.err (!%p214_p7)
}
  0x10   :  { %s245_s22 = smov 128   ;;  %s246_s23 = smov 8  }
  0x11   :  { %21 = dma.hbm_to_vmem [thread:$0]  %s338_s0, 256, %s16_s13, [#allocation3], %s245_s22, %s245_s22, %s246_s23  }
  0x12   :  { %240 = dma.done.wait [#allocation3], 256  }
  0x13   :  { %241 = vsyncadd [#allocation3], 4294967040  ;;  %vm37_vm0 = vcmask 1043456   ;;  %v285_v0 = vld [vmem:[#allocation2] sm:$0xff]  ;;  %v287_v1 = vld [vmem:[#allocation2 + $0x8] sm:$0xff]  ;;  %v247_v20 = vmov 0   ;;  %v88_v30 = vlaneseq }
  0x14   :  { %v33_v2 = vcombine.high %v285_v0, %v285_v0  ;;  %v38_v3 = vsel %vm37_vm0, %v285_v0, 0.0  ;;  %v48_v4 = vmul.f32 %v285_v0, %v285_v0  ;;  %v34_v5 = vcombine.high %v287_v1, %v287_v1  ;;  %189 = vset.pattern.permute.xlu1 %v247_v20  ;;  %188 = vset.pattern.permute.xlu0 %v247_v20  ;;  %v99_v52 = vld [vmem:[%s339_s1] sm:$0xf]  ;;  %s249_s1 = smov [#allocation5]  }
  0x15   :  { %v43_v6 = vsel %vm37_vm0, %v287_v1, 0.0  ;;  %v49_v7 = vmul.f32 %v287_v1, %v287_v1  ;;  %v89_v43 = vshrl.u32 %v88_v30, 7  ;;  %v100_v58 = vld [vmem:[%s340_s2] sm:$0xf]  ;;  %s170_s2 = sshll.u32 %s249_s1, 4  ;;  %s171_s2 = int_to_ptr.vmem [resolvable:$true] %s170_s2 }
  0x16   :  { %v39_v8 = vsel %vm37_vm0, %v33_v2, 0.0  ;;  %v52_v9 = vcombine.high %v48_v4, %v48_v4  ;;  %v56_v10 = vsel %vm37_vm0, %v48_v4, 0.0  ;;  %v44_v11 = vsel %vm37_vm0, %v34_v5, 0.0  ;;  %s218_s29 = scalar_lea.vmem %s171_s2, 256  ;;  %p223_p9 = scmp.lt.s32.totalorder %s171_s2, %s171_s2 }
  0x17   :  { %v40_v12 = vadd.f32 %v39_v8, %v38_v3  ;;  %v53_v13 = vcombine.high %v49_v7, %v49_v7  ;;  %v61_v15 = vsel %vm37_vm0, %v49_v7, 0.0  ;;  %v45_v17 = vadd.f32 %v44_v11, %v43_v6  ;;  %p219_p8 = scmp.ne.s32.totalorder %s171_s2, %s218_s29  ;;  %p224_p10 = scmp.lt.s32.totalorder %s218_s29, %s218_s29 }
  0x18   :  { %v57_v14 = vsel %vm37_vm0, %v52_v9, 0.0  ;;  %vm92_vm1 = vcmp.lt.s32.totalorder %v89_v43, 2  ;;  %v248_v2 = vmov 839922192  }
  0x19   :  { %41 = vadd.xlane.f32.xlu0 %v40_v12  ;;  %v58_v16 = vadd.f32 %v57_v14, %v56_v10  ;;  %v62_v18 = vsel %vm37_vm0, %v53_v13, 0.0  ;;  %v120_v3 = vunpack.c.l.s4 %v248_v2  ;;  %p225_p11 = por %p224_p10, %p223_p9 }
  0x1a   :  { %v63_v19 = vadd.f32 %v62_v18, %v61_v15 }
  0x1b   :  { %59 = vadd.xlane.f32.xlu1 %v58_v16  ;;  %v121_v4 = vunpack.c.0.s8 %v120_v3  ;;  %p226_p12 = pnand %p225_p11, %p219_p8 }
  0x1d   :  { %46 = vadd.xlane.f32.xlu0 %v45_v17  ;;  %v124_v5 = vsub.s32 %v121_v4, %v89_v43 }
  0x1f   :  { %64 = vadd.xlane.f32.xlu1 %v63_v19 }
  0xa6   :  { %v42_v21 = vpop.xlane.xlu0 %41 }
  0xa7   :  { %v66_v22 = vmul.f32 0.00390625, %v42_v21  ;;  %v76_v25 = vsel %vm37_vm0, %v42_v21, 0.0 }
  0xa8   :  { %v60_v23 = vpop.xlane.xlu1 %59 }
  0xa9   :  { %v70_v28 = vmul.f32 %v66_v22, %v66_v22  ;;  %v68_v29 = vmul.f32 0.00390625, %v60_v23  ;;  %v80_v33 = vsel %vm37_vm0, %v60_v23, 0.0 }
  0xaa   :  { %v47_v24 = vpop.xlane.xlu0 %46 }
  0xab   :  { %v67_v26 = vmul.f32 0.00390625, %v47_v24  ;;  %v77_v27 = vsel %vm37_vm0, %v47_v24, 0.0  ;;  %v72_v39 = vsub.f32 %v68_v29, %v70_v28 }
  0xac   :  { %v78_v31 = vadd.f32 %v77_v27, %v76_v25  ;;  %v65_v32 = vpop.xlane.xlu1 %64 }
  0xad   :  { %v71_v34 = vmul.f32 %v67_v26, %v67_v26  ;;  %v69_v35 = vmul.f32 0.00390625, %v65_v32  ;;  %v81_v36 = vsel %vm37_vm0, %v65_v32, 0.0  ;;  %v74_v45 = vmax.f32 %v72_v39, 0.0 }
  0xae   :  { %v79_v37 = vmul.f32 0.001953125, %v78_v31  ;;  %v82_v38 = vadd.f32 %v81_v36, %v80_v33 }
  0xaf   :  { %v73_v40 = vsub.f32 %v69_v35, %v71_v34 }
  0xb0   :  { %v83_v41 = vmul.f32 0.001953125, %v82_v38  ;;  %v84_v42 = vmul.f32 %v79_v37, %v79_v37  ;;  %v95_v57 = vsel %vm92_vm1, %v66_v22, %v79_v37  ;;  %v96_v60 = vsel %vm92_vm1, %v67_v26, %v79_v37 }
  0xb1   :  { %v75_v46 = vmax.f32 %v73_v40, 0.0 }
  0xb2   :  { %v85_v44 = vsub.f32 %v83_v41, %v84_v42 }
  0xb4   :  { %v86_v47 = vmax.f32 %v85_v44, 0.0 }
  0xb6   :  { %v97_v48 = vsel %vm92_vm1, %v74_v45, %v86_v47  ;;  %v98_v49 = vsel %vm92_vm1, %v75_v46, %v86_v47 }
  0xb7   :  { %v101_v50 = vadd.f32 1e-05, %v97_v48  ;;  %v102_v51 = vadd.f32 1e-05, %v98_v49 }
  0xb9   :  { %192 = vrsqrt.f32 %v101_v50 }
  0xba   :  { %194 = vrsqrt.f32 %v102_v51 }
  0xc3   :  { %v193_v53 = vpop.eup %192 }
  0xc4   :  { %v195_v54 = vpop.eup %194  ;;  %v105_v55 = vmul.f32 %v193_v53, %v99_v52 }
  0xc5   :  { %v106_v56 = vmul.f32 %v195_v54, %v99_v52 }
  0xc6   :  { %113 = vperm.xlu0 %188, %v105_v55   ;;  %v107_v59 = vmul.f32 %v105_v55, %v95_v57 }
  0xc7   :  { %117 = vperm.xlu1 %189, %v106_v56   ;;  %v108_v62 = vmul.f32 %v106_v56, %v96_v60 }
  0xc8   :  { %v109_v61 = vsub.f32 %v100_v58, %v107_v59 }
  0xc9   :  { %v110_v63 = vsub.f32 %v100_v58, %v108_v62 }
  0xcb   :  { %139 = vperm.xlu1 %189, %v109_v61  }
  0xcf   :  { %143 = vperm.xlu1 %189, %v110_v63  }
 0x145   :  { %v114_v6 = vpop.permute.xlu0 %113 }
 0x146   :  { %v118_v7 = vpop.permute.xlu1 %117  ;;  %v125_v8 = vrot.slane %v114_v6, %v124_v5 }
 0x147   :  { %v132_v10 = vrot.slane %v118_v7, %v124_v5 }
 0x148   :  { %v135_v11 = vmul.f32 %v125_v8, %v285_v0 }
 0x149   :  { %v136_v15 = vmul.f32 %v132_v10, %v287_v1 }
 0x14a   :  { %v140_v9 = vpop.permute.xlu1 %139 }
 0x14b   :  { %v151_v12 = vrot.slane %v140_v9, %v124_v5 }
 0x14d   :  { %v161_v13 = vadd.f32 %v151_v12, %v135_v11 }
 0x14e   :  { %v144_v14 = vpop.permute.xlu1 %143 }
 0x14f   :  { %163 = vst [vmem:[#allocation5] sm:$0xff] %v161_v13  ;;  %v158_v16 = vrot.slane %v144_v14, %v124_v5 }
 0x151   :  { %v162_v17 = vadd.f32 %v158_v16, %v136_v15 }
 0x153   :  { %164 = vst [vmem:[#allocation5 + $0x8] sm:$0xff] %v162_v17 }
 0x154   :  { %229 = shalt.err (!%p226_p12)
}
 0x155   :  { %s230_s5 = scalar_lea.hbm %s341_s3, 256 }
 0x156   :  { %p231_p13 = scmp.ne.s32.totalorder %s341_s3, %s230_s5  ;;  %p234_p0 = scmp.lt.u32.totalorder %s230_s5, %s341_s3 }
 0x158   :  { %p236_p1 = pnand %p234_p0, %p231_p13 }
 0x15a   :  { %239 = shalt.err (!%p236_p1)
}
 0x15b   :  { %176 = dma.vmem_to_hbm [thread:$0]  %s171_s2, 256, %s341_s3, [#allocation4], %s245_s22, %s245_s22, %s246_s23  }
 0x15c   :  { %242 = dma.done.wait [#allocation4], 256  }
 0x15d   :  { %243 = vsyncadd [#allocation4], 4294967040 }
 0x15e   :  { %180 = vsyncpa [#allocation3], 1 }
 0x15f   :  { %181 = vsyncpa [#allocation4], 1 }

</bundles_post_ra>
